<compile_context>
chip_gen: v7x
topology: tpu7x:2x2x1
jax: 0.10.0
libtpu: 0.0.40
codegen_flags: <defaults>
</compile_context>

<pallas_src>
import functools

import jax
import jax.numpy as jnp
from jax.experimental import pallas as pl
from jax.experimental.pallas import tpu as pltpu


def _round_up(x, m):
    return (x + m - 1) // m * m


def _choose_batch_tile(batch, per_elem_bytes, *, min_steps=4, max_block_bytes=2 << 20):
    """Largest divisor of `batch` whose block stays under max_block_bytes while
    keeping at least min(min_steps, batch) grid steps (>= 2 per v7x core)."""
    bt = 1
    for cand in range(1, batch + 1):
        if batch % cand:
            continue
        if cand > 1 and cand * per_elem_bytes > max_block_bytes:
            break
        if batch // cand < min(min_steps, batch):
            break
        bt = cand
    return bt


def _conv_flat_kernel(x_ref, w_ref, o_ref, *, ks, wp, lp):
    """All filters / all taps for one batch tile, lane-dense.

    x_ref: (BT, C, Lp) f32 VMEM  zero-padded, row-major-flattened input planes
    w_ref: (F,  ks*ks) f32 VMEM  per-filter tap weights (C == F after wrapper prep)
    o_ref: (BT, F, Lp) f32 VMEM  flat accumulation planes (wrapper extracts outputs)
    """
    bt = x_ref.shape[0]
    w = w_ref[...]                                        # (F, ks*ks)
    # TODO(synk): for very large BT or kernel_size switch these static Python
    # loops to lax.fori_loop(..., unroll=small) to bound unrolled code size.
    for bi in range(bt):
        plane = x_ref[bi]                                 # (C, Lp), C == F
        acc = plane * w[:, 0:1]                           # tap (0, 0): zero shift
        for t in range(1, ks * ks):
            dh, dw = divmod(t, ks)
            off = dh * wp + dw
            shifted = pltpu.roll(plane, lp - off, axis=1)  # lane shift (XLU slot)
            acc = acc + shifted * w[:, t:t + 1]
        o_ref[bi] = acc                                   # unmasked 128-lane stores


def conv_forward(x, kernel, kernel_size, padding=False, stride=(1, 1)):
    """Pallas equivalent of Conv.forward.  x: (B, C, H, W), kernel: (F, ks, ks)."""
    rs, cs = stride
    assert rs >= 1 and cs >= 1
    B, C, H, W = x.shape
    F = int(kernel.shape[0])
    ks = int(kernel_size)
    # PyTorch broadcasting in the reference requires C == num_filters or C == 1.
    assert C == F or C == 1, "reference semantics require C == num_filters or C == 1"

    # torch.nn.ZeroPad2d((p, p, p, p)) with p = ks // 2 pads both spatial axes by p.
    p = ks // 2 if padding else 0
    Hp, Wp = H + 2 * p, W + 2 * p
    assert Hp >= ks and Wp >= ks
    h_out = 1 + (Hp - ks) // rs
    w_out = 1 + (Wp - ks) // cs

    x = x.astype(jnp.float32)
    if C == 1 and F > 1:
        # Degenerate broadcast-channel case: materialize the broadcast once in
        # the wrapper so the kernel stays fully filter-vectorized.
        x = jnp.broadcast_to(x, (B, F, H, W))
        C = F

    # --- input layout plumbing (single fused XLA pass) -----------------------
    if p > 0:
        x = jnp.pad(x, ((0, 0), (0, 0), (p, p), (p, p)))
    L = Hp * Wp
    Lp = _round_up(L, 128)                       # lane-dense flat plane length
    x_flat = x.reshape(B, C, L)
    if Lp > L:
        x_flat = jnp.pad(x_flat, ((0, 0), (0, 0), (0, Lp - L)))
    w_flat = kernel.astype(jnp.float32).reshape(F, ks * ks)

    per_elem_bytes = (C + F) * Lp * 4
    BT = _choose_batch_tile(B, per_elem_bytes)
    grid = (B // BT,)

    block_bytes = BT * per_elem_bytes
    # Double-buffered in/out blocks + weights + slack; 48 MiB cap is safe on
    # v7x (64 MiB physical) and conservative on v5e/v6e (128 MiB).
    vmem_limit = int(min(max(4 * block_bytes + (1 << 20), 32 << 20), 48 << 20))

    kernel_fn = functools.partial(_conv_flat_kernel, ks=ks, wp=Wp, lp=Lp)

    out_flat = pl.pallas_call(
        kernel_fn,
        out_shape=jax.ShapeDtypeStruct((B, F, Lp), jnp.float32),
        grid_spec=pltpu.PrefetchScalarGridSpec(
            num_scalar_prefetch=0,
            grid=grid,
            in_specs=[
                # Last-two block dims equal the full (C, Lp) array extents, so
                # the (8, 128) divisibility rule holds; only batch is tiled.
                pl.BlockSpec((BT, C, Lp), lambda b: (b, 0, 0)),
                # Whole filter bank resident in VMEM (constant index map).
                pl.BlockSpec((F, ks * ks), lambda b: (0, 0)),
            ],
            out_specs=pl.BlockSpec((BT, F, Lp), lambda b: (b, 0, 0)),
        ),
        compiler_params=pltpu.CompilerParams(
            dimension_semantics=("parallel",),
            vmem_limit_bytes=vmem_limit,
        ),
    )(x_flat, w_flat)

    # --- output extraction (wrapper-side layout plumbing, not compute) -------
    out_full = out_flat[:, :, :L].reshape(B, F, Hp, Wp)
    out = out_full[:, :, : rs * (h_out - 1) + 1 : rs, : cs * (w_out - 1) + 1 : cs]
    return out


def conv_reference(x, kernel, kernel_size, padding=False, stride=(1, 1)):
    """Pure-JAX reference matching the PyTorch loop semantics (for validation)."""
    rs, cs = stride
    if padding:
        p = kernel_size // 2
        x = jnp.pad(x, ((0, 0), (0, 0), (p, p), (p, p)))
    Hp, Wp = x.shape[-2], x.shape[-1]
    h_out = 1 + (Hp - kernel_size) // rs
    w_out = 1 + (Wp - kernel_size) // cs
    out = jnp.zeros((x.shape[0], kernel.shape[0], h_out, w_out), jnp.float32)
    for dh in range(kernel_size):
        for dw in range(kernel_size):
            patch = x[:, :, dh: dh + rs * (h_out - 1) + 1: rs,
                            dw: dw + cs * (w_out - 1) + 1: cs]
            out = out + patch * kernel[None, :, dh, dw, None, None]
    return out


if __name__ == "__main__":
    # Module config: kernel_size=3, out_channels=4, padding=True, stride=(1,1).
    kernel_size = 3
    out_channels = 4

    key = jax.random.PRNGKey(0)
    k_in, k_w, k_in1 = jax.random.split(key, 3)
    x = jax.random.normal(k_in, (2, 4, 16, 16), dtype=jnp.float32)
    # Deterministic stand-in for torch.rand((out_channels, ks, ks)).
    kern = jax.random.uniform(k_w, (out_channels, kernel_size, kernel_size),
                              dtype=jnp.float32)

    # Padded, stride (1,1) -- the module's configured forward.
    out = jax.block_until_ready(
        conv_forward(x, kern, kernel_size, padding=True, stride=(1, 1)))
    ref = conv_reference(x, kern, kernel_size, padding=True, stride=(1, 1))
    assert out.shape == (2, out_channels, 16, 16), out.shape
    assert jnp.allclose(out, ref, atol=1e-5, rtol=1e-5), "mismatch (padding=True)"

    # Unpadded case.
    out2 = jax.block_until_ready(
        conv_forward(x, kern, kernel_size, padding=False, stride=(1, 1)))
    ref2 = conv_reference(x, kern, kernel_size, padding=False, stride=(1, 1))
    assert out2.shape == (2, out_channels, 14, 14), out2.shape
    assert jnp.allclose(out2, ref2, atol=1e-5, rtol=1e-5), "mismatch (padding=False)"

    # Strided case (accumulate-unstrided / subsample-on-extract path).
    out3 = jax.block_until_ready(
        conv_forward(x, kern, kernel_size, padding=True, stride=(2, 2)))
    ref3 = conv_reference(x, kern, kernel_size, padding=True, stride=(2, 2))
    assert out3.shape == (2, out_channels, 8, 8), out3.shape
    assert jnp.allclose(out3, ref3, atol=1e-5, rtol=1e-5), "mismatch (stride=(2,2))"

    # Broadcast-channel (C == 1) case.
    x1 = jax.random.normal(k_in1, (2, 1, 16, 16), dtype=jnp.float32)
    out4 = jax.block_until_ready(
        conv_forward(x1, kern, kernel_size, padding=True, stride=(1, 1)))
    ref4 = conv_reference(x1, kern, kernel_size, padding=True, stride=(1, 1))
    assert out4.shape == (2, out_channels, 16, 16), out4.shape
    assert jnp.allclose(out4, ref4, atol=1e-5, rtol=1e-5), "mismatch (C == 1)"

    print("KERNEL_OK")
</pallas_src>

<mosaic_0001>
module attributes {stable_mosaic.version = 11 : i64} {
  func.func @_conv_flat_kernel(%arg0: i32, %arg1: memref<1x4x384xf32, #tpu.memory_space<vmem>>, %arg2: memref<4x9xf32, #tpu.memory_space<vmem>>, %arg3: memref<1x4x384xf32, #tpu.memory_space<vmem>>) attributes {dimension_semantics = [#tpu.dimension_semantics<parallel>], iteration_bounds = array<i64: 2>, scalar_prefetch = 0 : i64, scratch_operands = 0 : i64, tpu.core_type = #tpu.core_type<tc>, window_params = [{transform_indices = @transform_0, window_bounds = array<i64: 1, 4, 384>}, {pipeline_mode = #tpu.pipeline_mode<synchronous>, transform_indices = @transform_1, window_bounds = array<i64: 4, 9>}, {transform_indices = @transform_2, window_bounds = array<i64: 1, 4, 384>}]} {
    %c0 = arith.constant 0 : index
    %c0_0 = arith.constant 0 : index
    %0 = vector.load %arg2[%c0, %c0_0] : memref<4x9xf32, #tpu.memory_space<vmem>>, vector<4x9xf32>
    %c0_1 = arith.constant 0 : index
    %c0_2 = arith.constant 0 : index
    %c0_3 = arith.constant 0 : index
    %1 = vector.load %arg1[%c0_1, %c0_2, %c0_3] : memref<1x4x384xf32, #tpu.memory_space<vmem>>, vector<1x4x384xf32>
    %2 = vector.shape_cast %1 : vector<1x4x384xf32> to vector<4x384xf32>
    %3 = vector.extract_strided_slice %0 {offsets = [0, 0], sizes = [4, 1], strides = [1, 1]} : vector<4x9xf32> to vector<4x1xf32>
    %4 = vector.broadcast %3 : vector<4x1xf32> to vector<4x384xf32>
    %5 = arith.mulf %2, %4 : vector<4x384xf32>
    %c383_i32 = arith.constant 383 : i32
    %6 = tpu.dynamic_rotate %2 by %c383_i32 dim 1 : vector<4x384xf32>, i32 -> vector<4x384xf32>
    %7 = vector.extract_strided_slice %0 {offsets = [0, 1], sizes = [4, 1], strides = [1, 1]} : vector<4x9xf32> to vector<4x1xf32>
    %8 = vector.broadcast %7 : vector<4x1xf32> to vector<4x384xf32>
    %9 = arith.mulf %6, %8 : vector<4x384xf32>
    %10 = arith.addf %5, %9 : vector<4x384xf32>
    %c382_i32 = arith.constant 382 : i32
    %11 = tpu.dynamic_rotate %2 by %c382_i32 dim 1 : vector<4x384xf32>, i32 -> vector<4x384xf32>
    %12 = vector.extract_strided_slice %0 {offsets = [0, 2], sizes = [4, 1], strides = [1, 1]} : vector<4x9xf32> to vector<4x1xf32>
    %13 = vector.broadcast %12 : vector<4x1xf32> to vector<4x384xf32>
    %14 = arith.mulf %11, %13 : vector<4x384xf32>
    %15 = arith.addf %10, %14 : vector<4x384xf32>
    %c366_i32 = arith.constant 366 : i32
    %16 = tpu.dynamic_rotate %2 by %c366_i32 dim 1 : vector<4x384xf32>, i32 -> vector<4x384xf32>
    %17 = vector.extract_strided_slice %0 {offsets = [0, 3], sizes = [4, 1], strides = [1, 1]} : vector<4x9xf32> to vector<4x1xf32>
    %18 = vector.broadcast %17 : vector<4x1xf32> to vector<4x384xf32>
    %19 = arith.mulf %16, %18 : vector<4x384xf32>
    %20 = arith.addf %15, %19 : vector<4x384xf32>
    %c365_i32 = arith.constant 365 : i32
    %21 = tpu.dynamic_rotate %2 by %c365_i32 dim 1 : vector<4x384xf32>, i32 -> vector<4x384xf32>
    %22 = vector.extract_strided_slice %0 {offsets = [0, 4], sizes = [4, 1], strides = [1, 1]} : vector<4x9xf32> to vector<4x1xf32>
    %23 = vector.broadcast %22 : vector<4x1xf32> to vector<4x384xf32>
    %24 = arith.mulf %21, %23 : vector<4x384xf32>
    %25 = arith.addf %20, %24 : vector<4x384xf32>
    %c364_i32 = arith.constant 364 : i32
    %26 = tpu.dynamic_rotate %2 by %c364_i32 dim 1 : vector<4x384xf32>, i32 -> vector<4x384xf32>
    %27 = vector.extract_strided_slice %0 {offsets = [0, 5], sizes = [4, 1], strides = [1, 1]} : vector<4x9xf32> to vector<4x1xf32>
    %28 = vector.broadcast %27 : vector<4x1xf32> to vector<4x384xf32>
    %29 = arith.mulf %26, %28 : vector<4x384xf32>
    %30 = arith.addf %25, %29 : vector<4x384xf32>
    %c348_i32 = arith.constant 348 : i32
    %31 = tpu.dynamic_rotate %2 by %c348_i32 dim 1 : vector<4x384xf32>, i32 -> vector<4x384xf32>
    %32 = vector.extract_strided_slice %0 {offsets = [0, 6], sizes = [4, 1], strides = [1, 1]} : vector<4x9xf32> to vector<4x1xf32>
    %33 = vector.broadcast %32 : vector<4x1xf32> to vector<4x384xf32>
    %34 = arith.mulf %31, %33 : vector<4x384xf32>
    %35 = arith.addf %30, %34 : vector<4x384xf32>
    %c347_i32 = arith.constant 347 : i32
    %36 = tpu.dynamic_rotate %2 by %c347_i32 dim 1 : vector<4x384xf32>, i32 -> vector<4x384xf32>
    %37 = vector.extract_strided_slice %0 {offsets = [0, 7], sizes = [4, 1], strides = [1, 1]} : vector<4x9xf32> to vector<4x1xf32>
    %38 = vector.broadcast %37 : vector<4x1xf32> to vector<4x384xf32>
    %39 = arith.mulf %36, %38 : vector<4x384xf32>
    %40 = arith.addf %35, %39 : vector<4x384xf32>
    %c346_i32 = arith.constant 346 : i32
    %41 = tpu.dynamic_rotate %2 by %c346_i32 dim 1 : vector<4x384xf32>, i32 -> vector<4x384xf32>
    %42 = vector.extract_strided_slice %0 {offsets = [0, 8], sizes = [4, 1], strides = [1, 1]} : vector<4x9xf32> to vector<4x1xf32>
    %43 = vector.broadcast %42 : vector<4x1xf32> to vector<4x384xf32>
    %44 = arith.mulf %41, %43 : vector<4x384xf32>
    %45 = arith.addf %40, %44 : vector<4x384xf32>
    %c0_4 = arith.constant 0 : index
    %c0_5 = arith.constant 0 : index
    %c0_6 = arith.constant 0 : index
    %46 = vector.load %arg3[%c0_4, %c0_5, %c0_6] : memref<1x4x384xf32, #tpu.memory_space<vmem>>, vector<1x4x384xf32>
    %47 = vector.shape_cast %46 : vector<1x4x384xf32> to vector<4x384xf32>
    %48 = vector.shape_cast %45 : vector<4x384xf32> to vector<1x4x384xf32>
    tpu.vector_store %arg3[%c0_4, %c0_5, %c0_6], %48 {strides = array<i32>} : memref<1x4x384xf32, #tpu.memory_space<vmem>>, vector<1x4x384xf32>,
    return
  }
  func.func @transform_0(%arg0: i32) -> (i32, i32, i32) {
    %c0_i32 = arith.constant 0 : i32
    %c0_i32_0 = arith.constant 0 : i32
    %c0_i32_1 = arith.constant 0 : i32
    return %arg0, %c0_i32, %c0_i32_0 : i32, i32, i32
  }
  func.func @transform_1(%arg0: i32) -> (i32, i32) {
    %c0_i32 = arith.constant 0 : i32
    %c0_i32_0 = arith.constant 0 : i32
    %c0_i32_1 = arith.constant 0 : i32
    return %c0_i32, %c0_i32_0 : i32, i32
  }
  func.func @transform_2(%arg0: i32) -> (i32, i32, i32) {
    %c0_i32 = arith.constant 0 : i32
    %c0_i32_0 = arith.constant 0 : i32
    %c0_i32_1 = arith.constant 0 : i32
    return %arg0, %c0_i32, %c0_i32_0 : i32, i32, i32
  }
}

</mosaic_0001>

<bundles_post_ra>
// kernel: tpu_custom_call.1
= control target key start
LH: loop header
LB: loop body
LE: loop exit
PB: predicated region body
PF: predicated region fallthrough
CT: control target
= control target key end

     0   :  { %7 = vsyncpa [#allocation3], 0  ;;  %s1042_s0 = inlined_call_operand.hbm [shape: f32[2,4,384], index: 0, kind: input, shape index: {}]   ;;  %s1043_s1 = inlined_call_operand.hbm [shape: f32[4,9], index: 1, kind: input, shape index: {}]   ;;  %s1044_s2 = inlined_call_operand.hbm [shape: f32[2,4,384], index: 2, kind: output, shape index: {}]  }
   0x1   :  { %9 = vsyncpa [#allocation3 + $0x1], 0 }
   0x2   :  { %10 = vsyncpa [#allocation6], 0 }
   0x3   :  { %11 = vsyncpa [#allocation4], 0 }
   0x4   :  { %13 = vsyncpa [#allocation4 + $0x1], 0  ;;  %s742_s9 = smov 0   ;;  %s744_s10 = smov 0  }
   0x5   :  { %s746_s11 = smov 0   ;;  %s748_s12 = smov 0  }
   0x6 LB: > { %s763_s13 = sadd.s32 4294967295, %s704_s12   ;;  %s476_s14 = sadd.s32 4294967294, %s704_s12   ;;  %s704_s12 = sphi %s748_s12, %s1068_s12   ;;  %s700_s11 = sphi %s746_s11, %s1067_s11   ;;  %s696_s10 = sphi %s744_s10, %s1066_s10   ;;  %s692_s9 = sphi %s742_s9, %s1065_s9  }
   0x7   : > { %p39_p0 = scmp.ne.s32.totalorder %s696_s10, %s692_s9  ;;  %p1045_p1 = scmp.eq.s32.totalorder %s763_s13, 0 }
   0x8   : > { %p90_p3 = scmp.eq.s32.totalorder %s476_s14, 1  ;;  %p477_p5 = scmp.ge.s32.totalorder %s704_s12, 1 }
   0x9   : > { %p772_p4 = por %p1045_p1, %p39_p0  ;;  %p97_p7 = scmp.lt.s32.totalorder %s704_s12, 3 }
   0xa   : > { %p777_p6 = por %p90_p3, %p39_p0  ;;  %s706_s18 = smov [#allocation5]  }
   0xb   : > { %s1048_s15 = scalar_select %p772_p4, 1, 0 }
   0xc   : > { %s1049_s16 = scalar_select %p777_p6, 1, 0 }
   0xd   : > { %p782_p8 = pnand %p477_p5, %p97_p7  ;;  %s110_s19 = sshll.u32 %s706_s18, 4  ;;  %s111_s19 = int_to_ptr.vmem [resolvable:$true] %s110_s19 }
   0xe   : > { %s790_s20 = sadd.s32 1, %s704_s12   ;;  %s26_s24 = sadd.s32 1, %s700_s11 }
   0xf   : > { %s1050_s17 = scalar_select %p782_p8, 1, 0 }
  0x10   : > { %p498_p10 = pneg %p782_p8  ;;  %s23_s22 = ssub.s32 %s704_s12, %s790_s20 }
  0x11   : > { %p800_p12 = scmp.eq.s32.totalorder %s23_s22, 0  ;;  %s576_s27 = scalar_lea.hbm %s1043_s1, 64 }
  0x12   : > { %p794_p11 = pnand %p498_p10, %p1045_p1  ;;  %p577_p0 = scmp.ne.s32.totalorder %s1043_s1, %s576_s27 }
  0x13   : > { %s1052_s23 = scalar_select %p800_p12, 1, 0 }
  0x14   : > { %p578_p3 = pneg %p794_p11  ;;  %p583_p10 = scmp.lt.u32.totalorder %s576_s27, %s1043_s1 }
  0x16   : > { %p579_p5 = pnand %p578_p3, %p577_p0 }
  0x18   : > { %p580_p7 = pneg %p579_p5 }
  0x1a   : > { %p585_p9 = pnand %p583_p10, %p580_p7 }
  0x1c   : > { %588 = shalt.err (!%p585_p9)
}
  0x1d   : > { %s589_s4 = scalar_lea.vmem %s111_s19, 64  ;;  %p597_p6 = scmp.lt.s32.totalorder %s111_s19, %s111_s19 }
  0x1e   : > { %p590_p1 = scmp.ne.s32.totalorder %s111_s19, %s589_s4  ;;  %p598_p4 = scmp.lt.s32.totalorder %s589_s4, %s589_s4 }
  0x20   : > { %p592_p2 = pnand %p590_p1, %p578_p3  ;;  %p599_p8 = por %p598_p4, %p597_p6 }
  0x22   : > { %p593_p13 = pneg %p592_p2 }
  0x24   : > { %p600_p12 = pnand %p599_p8, %p593_p13 }
  0x26   : > { %603 = shalt.err (!%p600_p12)
}
  0x27   : > { %501 = dma.hbm_to_vmem [thread:$0]  (!%p794_p11), %s1043_s1, 64, %s111_s19, [#allocation6]  }
  0x28   : > { %p1053_p1 = scmp.ne.s32.totalorder %s1052_s23, 0  ;;  %p34_p2 = scmp.eq.s32.totalorder %s704_s12, 0 }
  0x29   : > { %p1054_p4 = scmp.ne.s32.totalorder %s700_s11, %s696_s10  ;;  %p1055_p6 = scmp.eq.s32.totalorder %s763_s13, 1 }
  0x2a   : > { %s826_s7 = scalar_select %p1053_p1, %s700_s11, %s26_s24  }
  0x2b   : > { %p834_p8 = por %p1055_p6, %p1054_p4  ;;  %p511_p9 = scmp.lt.s32.totalorder %s704_s12, 2 }
  0x2c   : > { %s121_s14 = sand.u32 1, %s700_s11   ;;  %p1057_p12 = pmov %p1054_p4 }
  0x2d   : > { %s486_s18 = smul.u32 12, %s121_s14  ;;  %s122_s27 = scalar_lea.sflag [#allocation3], %s121_s14 }
  0x2e   : > { %p35_p13 = por %p34_p2, %p1057_p12  ;;  %s487_s21 = smul.u32 192, %s704_s12 }
  0x2f   : > { %s125_s25 = scalar_lea.vmem [#allocation2], %s486_s18  ;;  %s609_s3 = scalar_lea.hbm %s1042_s0, 384 }
  0x30   : > { %p844_p0 = pnand %p511_p9, %p35_p13  ;;  %s851_s24 = scalar_lea.hbm %s1042_s0, %s487_s21 }
  0x31   : > { %s133_s26 = sshll.u32 %s125_s25, 4  ;;  %s604_s28 = scalar_lea.hbm %s851_s24, 192  ;;  %s853_s26 = int_to_ptr.vmem [resolvable:$true] %s133_s26 }
  0x32   : > { %p605_p11 = scmp.ne.s32.totalorder %s851_s24, %s604_s28  ;;  %p606_p3 = pneg %p844_p0 }
  0x33   : > { %p610_p10 = scmp.lt.u32.totalorder %s851_s24, %s1042_s0  ;;  %p611_p1 = scmp.lt.u32.totalorder %s609_s3, %s604_s28 }
  0x34   : > { %p607_p5 = pnand %p606_p3, %p605_p11  ;;  %p613_p4 = scmp.lt.u32.totalorder %s604_s28, %s851_s24 }
  0x35   : > { %p612_p2 = por %p611_p1, %p610_p10 }
  0x36   : > { %p608_p7 = pneg %p607_p5 }
  0x37   : > { %p614_p6 = por %p613_p4, %p612_p2 }
  0x39   : > { %p615_p9 = pnand %p614_p6, %p608_p7 }
  0x3b   : > { %618 = shalt.err (!%p615_p9)
}
  0x3c   : > { %s619_s6 = scalar_lea.vmem %s853_s26, 192  ;;  %s707_s14 = smov [#allocation2]  }
  0x3d   : > { %p620_p12 = scmp.ne.s32.totalorder %s853_s26, %s619_s6  ;;  %s624_s18 = sshll.u32 %s707_s14, 4  ;;  %s625_s18 = int_to_ptr.vmem [resolvable:$false] %s624_s18 }
  0x3e   : > { %s626_s21 = scalar_lea.vmem %s625_s18, 384  ;;  %p627_p5 = scmp.lt.s32.totalorder %s853_s26, %s625_s18 }
  0x3f   : > { %p622_p13 = pnand %p620_p12, %p606_p3  ;;  %p628_p10 = scmp.lt.s32.totalorder %s626_s21, %s619_s6 }
  0x41   : > { %p623_p11 = pneg %p622_p13  ;;  %p629_p1 = por %p628_p10, %p627_p5 }
  0x43   : > { %p630_p2 = pnand %p629_p1, %p623_p11 }
  0x45   : > { %633 = shalt.err (!%p630_p2)
}
  0x46   : > { %505 = dma.hbm_to_vmem [thread:$0]  (!%p844_p0), %s851_s24, 192, %s853_s26, %s122_s27  }
  0x47   : > { %p1059_p7 = scmp.ne.s32.totalorder %s1050_s17, 0 }
  0x48   : > { %s883_s19 = sand.u32 (!%p1059_p7), 1, %s696_s10   ;;  %p1060_p3 = scmp.ne.s32.totalorder (!%p1059_p7), %s1048_s15, 0 }
  0x49   : > { %142 = sbr.rel (%p1059_p7) target bundleno = 300 (0x12c), region = 28  ;;  %s145_s25 = scalar_lea.sflag (!%p1059_p7), [#allocation3], %s883_s19 }
  0x4a   : > { %s488_s23 = smul.u32 (!%p1059_p7), 12, %s883_s19 }
  0x4c   : > { %s148_s28 = scalar_lea.vmem (!%p1059_p7), [#allocation2], %s488_s23 }
  0x50   : > { %679 = dma.done.wait (%p1060_p3), %s145_s25, 192  }
  0x51   : > { %681 = vsyncadd (%p1060_p3), %s145_s25, 4294967104  ;;  %p1061_p0 = scmp.eq.s32.totalorder %s763_s13, 0 }
  0x53   : > { %683 = dma.done.wait (%p1061_p0), [#allocation6], 64   ;;  %p1062_p4 = pmov %p1061_p0 }
  0x54   : > { %v708_v0 = vmov 2   ;;  %v709_v1 = vmov 0   ;;  %v173_v2 = vld [vmem:[#allocation5] sm:$0xf]  ;;  %v897_v3 = vld [vmem:[%s148_s28] sm:$0xff]  ;;  %v710_v4 = vmov 3   ;;  %v183_v33 = vlaneseq }
  0x55   : > { %685 = vsyncadd (%p1062_p4), [#allocation6], 4294967232  ;;  %567 = vset.pattern.permute.xlu1 %v708_v0  ;;  %565 = vset.pattern.permute.xlu0 %v709_v1  ;;  %v711_v5 = vmov 1   ;;  %v191_v6 = vcombine.high %v897_v3, %v897_v3  ;;  %s712_s15 = smov 127   ;;  %v713_v7 = vmov 4   ;;  %v714_v9 = vmov 5  }
  0x56   : > { %229 = vperm.xlu1 %567, %v173_v2   ;;  %178 = vperm.xlu0 %565, %v173_v2   ;;  %v902_v8 = vld [vmem:[%s148_s28 + $0x8] sm:$0xf]  ;;  %s715_s17 = smov 126   ;;  %v716_v10 = vmov 8   ;;  %s717_s22 = smov 110   ;;  %v719_v11 = vmov 6  }
  0x57   : > { %s718_s24 = smov 109   ;;  %s720_s26 = smov 108   ;;  %v721_v12 = vmov 7   ;;  %v725_v31 = vmov 839922192   ;;  %v184_v37 = vshrl.u32 %v183_v33, 7 }
  0x58   : > { %s722_s27 = smov 92   ;;  %s723_s29 = smov 91   ;;  %v181_v32 = vunpack.c.l.s4 %v725_v31  ;;  %v925_v38 = vand.u32 127, %v183_v33 }
  0x59   : > { %s724_s30 = smov 90   ;;  %s489_s3 = smul.u32 192, %s763_s13 }
  0x5a   : > { %568 = vset.pattern.permute.xlu1 %v710_v4  ;;  %566 = vset.pattern.permute.xlu0 %v711_v5  ;;  %v182_v36 = vunpack.c.0.s8 %v181_v32  ;;  %vm201_vm0 = vcmp.lt.s32.totalorder %v925_v38, 127  ;;  %vm224_vm1 = vcmp.lt.s32.totalorder %v925_v38, 126  ;;  %vm247_vm2 = vcmp.lt.s32.totalorder %v925_v38, 110  ;;  %s172_s4 = scalar_lea.vmem [#allocation7], %s488_s23  ;;  %s382_s21 = scalar_lea.sflag [#allocation4], %s883_s19 }
  0x5b   : > { %252 = vperm.xlu1 %568, %v173_v2   ;;  %206 = vperm.xlu0 %566, %v173_v2   ;;  %vm270_vm3 = vcmp.lt.s32.totalorder %v925_v38, 109  ;;  %vm293_vm4 = vcmp.lt.s32.totalorder %v925_v38, 108  ;;  %vm316_vm5 = vcmp.lt.s32.totalorder %v925_v38, 92  ;;  %vm339_vm6 = vcmp.lt.s32.totalorder %v925_v38, 91  ;;  %s396_s5 = sshll.u32 %s172_s4, 4  ;;  %s998_s18 = scalar_lea.hbm %s1044_s2, %s489_s3  ;;  %s1000_s5 = int_to_ptr.vmem [resolvable:$true] %s396_s5 }
  0x5c   : > { %v185_v41 = vsub.s32 %v182_v36, %v184_v37  ;;  %vm362_vm7 = vcmp.lt.s32.totalorder %v925_v38, 90  ;;  %s634_s13 = scalar_lea.vmem %s1000_s5, 192  ;;  %s726_s23 = smov [#allocation7]  }
  0x5d   : > { %p635_p6 = scmp.ne.s32.totalorder %s1000_s5, %s634_s13  ;;  %s638_s25 = sshll.u32 %s726_s23, 4  ;;  %s639_s25 = int_to_ptr.vmem [resolvable:$false] %s638_s25 }
  0x5e   : > { %s640_s28 = scalar_lea.vmem %s639_s25, 384  ;;  %p641_p13 = scmp.lt.s32.totalorder %s1000_s5, %s639_s25 }
  0x5f   : > { %193 = vrot.lane.b32.xlu1 %v897_v3, %s712_s15  ;;  %195 = vrot.lane.b32.xlu0 %v191_v6, %s712_s15  ;;  %p636_p9 = pnand %p635_p6, %p834_p8  ;;  %p642_p11 = scmp.lt.s32.totalorder %s640_s28, %s634_s13 }
  0x60   : > { %569 = vset.pattern.permute.xlu0 %v713_v7  ;;  %570 = vset.pattern.permute.xlu1 %v714_v9 }
  0x61   : > { %p637_p12 = pneg %p636_p9  ;;  %p643_p5 = por %p642_p11, %p641_p13 }
  0x63   : > { %197 = vrot.lane.b32.xlu1 %v902_v8, %s712_s15  ;;  %275 = vperm.xlu0 %569, %v173_v2   ;;  %p644_p10 = pnand %p643_p5, %p637_p12 }
  0x67   : > { %218 = vrot.lane.b32.xlu1 %v897_v3, %s715_s17  ;;  %222 = vrot.lane.b32.xlu0 %v902_v8, %s715_s17 }
  0x68   : > { %574 = vset.pattern.permute.xlu0 %v716_v10 }
  0x6b   : > { %220 = vrot.lane.b32.xlu1 %v191_v6, %s715_s17  ;;  %241 = vrot.lane.b32.xlu0 %v897_v3, %s717_s22 }
  0x6f   : > { %298 = vperm.xlu1 %570, %v173_v2   ;;  %245 = vrot.lane.b32.xlu0 %v902_v8, %s717_s22 }
  0x73   : > { %243 = vrot.lane.b32.xlu1 %v191_v6, %s717_s22  ;;  %264 = vrot.lane.b32.xlu0 %v897_v3, %s718_s24 }
  0x74   : > { %571 = vset.pattern.permute.xlu1 %v719_v11 }
  0x77   : > { %321 = vperm.xlu1 %571, %v173_v2   ;;  %268 = vrot.lane.b32.xlu0 %v902_v8, %s718_s24 }
  0x7b   : > { %266 = vrot.lane.b32.xlu1 %v191_v6, %s718_s24  ;;  %287 = vrot.lane.b32.xlu0 %v897_v3, %s720_s26 }
  0x7c   : > { %572 = vset.pattern.permute.xlu1 %v721_v12 }
  0x7f   : > { %344 = vperm.xlu1 %572, %v173_v2   ;;  %291 = vrot.lane.b32.xlu0 %v902_v8, %s720_s26 }
  0x83   : > { %289 = vrot.lane.b32.xlu1 %v191_v6, %s720_s26  ;;  %310 = vrot.lane.b32.xlu0 %v897_v3, %s722_s27 }
  0x84   : > { %573 = vset.pattern.permute.xlu1 %v716_v10 }
  0x87   : > { %367 = vperm.xlu1 %573, %v173_v2   ;;  %314 = vrot.lane.b32.xlu0 %v902_v8, %s722_s27 }
  0x8b   : > { %312 = vrot.lane.b32.xlu1 %v191_v6, %s722_s27  ;;  %335 = vrot.lane.b32.xlu0 %v191_v6, %s723_s29 }
  0x8f   : > { %333 = vrot.lane.b32.xlu1 %v897_v3, %s723_s29  ;;  %356 = vrot.lane.b32.xlu0 %v897_v3, %s724_s30 }
  0x93   : > { %337 = vrot.lane.b32.xlu1 %v902_v8, %s723_s29  ;;  %360 = vrot.lane.b32.xlu0 %v902_v8, %s724_s30 }
  0x97   : > { %358 = vrot.lane.b32.xlu1 %v191_v6, %s724_s30 }
  0xd5   : > { %v230_v13 = vpop.permute.xlu1 %229  ;;  %v179_v14 = vpop.permute.xlu0 %178 }
  0xd6   : > { %v186_v46 = vrot.slane %v179_v14, %v185_v41 }
  0xd8   : > { %v189_v61 = vmul.f32 %v186_v46, %v902_v8  ;;  %v188_v6 = vmul.f32 %v186_v46, %v897_v3 }
  0xda   : > { %v253_v15 = vpop.permute.xlu1 %252  ;;  %v207_v16 = vpop.permute.xlu0 %206 }
  0xde   : > { %v194_v17 = vpop.permute.xlu1 %193  ;;  %v196_v18 = vpop.permute.xlu0 %195 }
  0xdf   : > { %v203_v47 = vsel %vm201_vm0, %v194_v17, %v196_v18 }
  0xe0   : > { %v209_v55 = vmul.f32 %v207_v16, %v203_v47 }
  0xe2   : > { %v198_v19 = vpop.permute.xlu1 %197  ;;  %v919_v20 = vpop.permute.xlu0 %275 }
  0xe3   : > { %v202_v42 = vsel %vm201_vm0, %v196_v18, %v198_v19  ;;  %v204_v43 = vsel %vm201_vm0, %v198_v19, %v194_v17 }
  0xe4   : > { %v210_v50 = vmul.f32 %v207_v16, %v202_v42  ;;  %v211_v52 = vmul.f32 %v207_v16, %v204_v43 }
  0xe6   : > { %v219_v21 = vpop.permute.xlu1 %218  ;;  %v223_v22 = vpop.permute.xlu0 %222  ;;  %v214_v1 = vcombine.low %v209_v55, %v210_v50  ;;  %v217_v7 = vadd.f32 %v211_v52, %v189_v61 }
  0xe7   : > { %v227_v51 = vsel %vm224_vm1, %v223_v22, %v219_v21 }
  0xe8   : > { %v234_v62 = vmul.f32 %v230_v13, %v227_v51  ;;  %v216_v18 = vadd.f32 %v214_v1, %v188_v6 }
  0xea   : > { %v221_v23 = vpop.permute.xlu1 %220  ;;  %v242_v24 = vpop.permute.xlu0 %241  ;;  %v240_v16 = vadd.f32 %v234_v62, %v217_v7 }
  0xeb   : > { %v225_v48 = vsel %vm224_vm1, %v221_v23, %v223_v22  ;;  %v226_v49 = vsel %vm224_vm1, %v219_v21, %v221_v23 }
  0xec   : > { %v232_v56 = vmul.f32 %v230_v13, %v226_v49  ;;  %v233_v57 = vmul.f32 %v230_v13, %v225_v48 }
  0xee   : > { %v921_v25 = vpop.permute.xlu1 %298  ;;  %v246_v26 = vpop.permute.xlu0 %245  ;;  %v237_v8 = vcombine.low %v232_v56, %v233_v57 }
  0xef   : > { %v250_v58 = vsel %vm247_vm2, %v246_v26, %v242_v24 }
  0xf0   : > { %v257_v9 = vmul.f32 %v253_v15, %v250_v58 }
  0xf2   : > { %v244_v27 = vpop.permute.xlu1 %243  ;;  %v265_v28 = vpop.permute.xlu0 %264  ;;  %v263_v22 = vadd.f32 %v257_v9, %v240_v16 }
  0xf3   : > { %v248_v53 = vsel %vm247_vm2, %v244_v27, %v246_v26  ;;  %v249_v54 = vsel %vm247_vm2, %v242_v24, %v244_v27  ;;  %v239_v26 = vadd.f32 %v237_v8, %v216_v18 }
  0xf4   : > { %v255_v2 = vmul.f32 %v253_v15, %v249_v54  ;;  %v256_v4 = vmul.f32 %v253_v15, %v248_v53 }
  0xf6   : > { %v923_v29 = vpop.permute.xlu1 %321  ;;  %v269_v30 = vpop.permute.xlu0 %268  ;;  %v260_v19 = vcombine.low %v255_v2, %v256_v4 }
  0xf7   : > { %v273_v5 = vsel %vm270_vm3, %v269_v30, %v265_v28 }
  0xf8   : > { %v280_v17 = vmul.f32 %v919_v20, %v273_v5 }
  0xfa   : > { %v267_v34 = vpop.permute.xlu1 %266  ;;  %v288_v35 = vpop.permute.xlu0 %287  ;;  %v286_v33 = vadd.f32 %v280_v17, %v263_v22 }
  0xfb   : > { %v271_v63 = vsel %vm270_vm3, %v267_v34, %v269_v30  ;;  %v272_v0 = vsel %vm270_vm3, %v265_v28, %v267_v34 }
  0xfc   : > { %v278_v10 = vmul.f32 %v919_v20, %v272_v0  ;;  %v279_v11 = vmul.f32 %v919_v20, %v271_v63 }
  0xfe   : > { %v927_v39 = vpop.permute.xlu1 %344  ;;  %v292_v40 = vpop.permute.xlu0 %291  ;;  %v283_v27 = vcombine.low %v278_v10, %v279_v11 }
  0xff   : > { %v296_v12 = vsel %vm293_vm4, %v292_v40, %v288_v35 }
 0x100   : > { %v303_v23 = vmul.f32 %v921_v25, %v296_v12 }
 0x102   : > { %v290_v44 = vpop.permute.xlu1 %289  ;;  %v311_v45 = vpop.permute.xlu0 %310 }
 0x103   : > { %v294_v3 = vsel %vm293_vm4, %v290_v44, %v292_v40  ;;  %v295_v15 = vsel %vm293_vm4, %v288_v35, %v290_v44  ;;  %v262_v35 = vadd.f32 %v260_v19, %v239_v26  ;;  %v309_v40 = vadd.f32 %v303_v23, %v286_v33 }
 0x104   : > { %v301_v28 = vmul.f32 %v921_v25, %v295_v15  ;;  %v302_v30 = vmul.f32 %v921_v25, %v294_v3 }
 0x105   : > { %v285_v42 = vadd.f32 %v283_v27, %v262_v35 }
 0x106   : > { %v940_v59 = vpop.permute.xlu1 %367  ;;  %v315_v60 = vpop.permute.xlu0 %314  ;;  %v306_v43 = vcombine.low %v301_v28, %v302_v30 }
 0x107   : > { %v319_v21 = vsel %vm316_vm5, %v315_v60, %v311_v45 }
 0x108   : > { %v326_v34 = vmul.f32 %v923_v29, %v319_v21  ;;  %v308_v52 = vadd.f32 %v306_v43, %v285_v42 }
 0x10a   : > { %v313_v13 = vpop.permute.xlu1 %312  ;;  %v336_v14 = vpop.permute.xlu0 %335 }
 0x10b   : > { %v317_v24 = vsel %vm316_vm5, %v313_v13, %v315_v60  ;;  %v318_v20 = vsel %vm316_vm5, %v311_v45, %v313_v13  ;;  %v332_v45 = vadd.f32 %v326_v34, %v309_v40 }
 0x10c   : > { %v324_v36 = vmul.f32 %v923_v29, %v318_v20  ;;  %v325_v37 = vmul.f32 %v923_v29, %v317_v24 }
 0x10e   : > { %v334_v31 = vpop.permute.xlu1 %333  ;;  %v357_v32 = vpop.permute.xlu0 %356  ;;  %v329_v48 = vcombine.low %v324_v36, %v325_v37 }
 0x10f   : > { %v341_v41 = vsel %vm339_vm6, %v334_v31, %v336_v14 }
 0x110   : > { %v347_v49 = vmul.f32 %v927_v39, %v341_v41  ;;  %v331_v60 = vadd.f32 %v329_v48, %v308_v52 }
 0x112   : > { %v338_v44 = vpop.permute.xlu1 %337  ;;  %v361_v25 = vpop.permute.xlu0 %360 }
 0x113   : > { %v340_v46 = vsel %vm339_vm6, %v336_v14, %v338_v44  ;;  %v342_v47 = vsel %vm339_vm6, %v338_v44, %v334_v31  ;;  %v365_v29 = vsel %vm362_vm7, %v361_v25, %v357_v32 }
 0x114   : > { %v348_v50 = vmul.f32 %v927_v39, %v340_v46  ;;  %v349_v51 = vmul.f32 %v927_v39, %v342_v47  ;;  %v372_v55 = vmul.f32 %v940_v59, %v365_v29 }
 0x116   : > { %v352_v53 = vcombine.low %v347_v49, %v348_v50  ;;  %v355_v54 = vadd.f32 %v349_v51, %v332_v45  ;;  %v359_v56 = vpop.permute.xlu1 %358 }
 0x117   : > { %v363_v57 = vsel %vm362_vm7, %v359_v56, %v361_v25  ;;  %v364_v58 = vsel %vm362_vm7, %v357_v32, %v359_v56 }
 0x118   : > { %v378_v61 = vadd.f32 %v372_v55, %v355_v54  ;;  %v370_v62 = vmul.f32 %v940_v59, %v364_v58  ;;  %v371_v39 = vmul.f32 %v940_v59, %v363_v57  ;;  %v354_v63 = vadd.f32 %v352_v53, %v331_v60 }
 0x11a   : > { %v375_v0 = vcombine.low %v370_v62, %v371_v39  ;;  %380 = vst [vmem:[%s172_s4 + $0x8] sm:$0xf] %v378_v61 }
 0x11c   : > { %v377_v1 = vadd.f32 %v375_v0, %v354_v63 }
 0x11e   : > { %379 = vst [vmem:[%s172_s4] sm:$0xff] %v377_v1 }
 0x11f   : > { %647 = shalt.err (!%p644_p10)
}
 0x120   : > { %s648_s19 = scalar_lea.hbm %s998_s18, 192  ;;  %s652_s22 = scalar_lea.hbm %s1044_s2, 384 }
 0x121   : > { %p649_p1 = scmp.ne.s32.totalorder %s998_s18, %s648_s19  ;;  %p653_p3 = scmp.lt.u32.totalorder %s998_s18, %s1044_s2 }
 0x122   : > { %p654_p0 = scmp.lt.u32.totalorder %s652_s22, %s648_s19  ;;  %p656_p6 = scmp.lt.u32.totalorder %s648_s19, %s998_s18 }
 0x123   : > { %p650_p2 = pnand %p649_p1, %p834_p8 }
 0x124   : > { %p655_p4 = por %p654_p0, %p653_p3 }
 0x125   : > { %p651_p7 = pneg %p650_p2 }
 0x126   : > { %p657_p9 = por %p656_p6, %p655_p4 }
 0x128   : > { %p658_p12 = pnand %p657_p9, %p651_p7 }
 0x12a   : > { %661 = shalt.err (!%p658_p12)
}
 0x12b   : > { %496 = dma.vmem_to_hbm [thread:$0]  (%p834_p8), %s1000_s5, 192, %s998_s18, %s382_s21  }
 0x12c PF: > { %s408_s27 = sand.u32 1, %s692_s9   ;;  %p1063_p13 = scmp.ne.s32.totalorder %s1049_s16, 0 }
 0x12d   : > { %p1064_p11 = scmp.ge.s32.totalorder %s704_s12, 2  ;;  %s409_s29 = scalar_lea.sflag [#allocation4], %s408_s27 }
 0x12f   : > { %p507_p5 = pnand %p1064_p11, %p1063_p13 }
 0x131   : > { %687 = dma.done.wait (!%p507_p5), %s409_s29, 192  }
 0x132   : > { %689 = vsyncadd (!%p507_p5), %s409_s29, 4294967104  ;;  %p16_p10 = scmp.ge.s32.totalorder %s790_s20, 4   ;;  %s1065_s9 = smov %s696_s10 }
 0x133   : > { %s1066_s10 = smov %s700_s11  ;;  %s1067_s11 = smov %s826_s7 }
 0x134   : > { %s1068_s12 = smov %s790_s20  ;;  %18 = sbr.rel (!%p16_p10) target bundleno = 6 (0x6), region = 77 }
 0x13b   :  { %414 = vsyncpa [#allocation3], 1 }
 0x13c   :  { %416 = vsyncpa [#allocation3 + $0x1], 1 }
 0x13d   :  { %417 = vsyncpa [#allocation6], 1 }
 0x13e   :  { %418 = vsyncpa [#allocation4], 1 }
 0x13f   :  { %420 = vsyncpa [#allocation4 + $0x1], 1 }

</bundles_post_ra>
